<compile_context>
chip_gen: v5e
topology: v5e:2x2
jax: 0.10.0
libtpu: 0.0.40
codegen_flags: <defaults>
</compile_context>

<pallas_src>
import jax
import jax.numpy as jnp
from jax.experimental import pallas as pl
from jax.experimental.pallas import tpu as pltpu

_NEG_SLOPE = 0.2
_BN_EPS = 1e-5
_STREAM_VMEM_BUDGET = 24 * 1024 * 1024   # target for double-buffered x/out streams
_HAS_BUFFERED = hasattr(pl, "Buffered")


def _round_up(x, m):
    return (x + m - 1) // m * m


def _cdiv(a, b):
    return -(-a // b)


# --------------------------------------------------------------------------
# Kernels
# --------------------------------------------------------------------------
def _rows_kernel(x_ref, w1_ref, w2_ref, shift_ref, o_ref):
    """Channels-last row tile.

    x_ref    : (tm, Cp)  caller dtype  (channels on the lane axis)
    w1_ref   : (Cp, Cp)  bf16          BN-scaled W1^T  (y = x @ w1_ref)
    w2_ref   : (Cp, Cp)  bf16          BN-scaled W2^T
    shift_ref: (8,  Cp)  f32           row 0 = shift1, row 1 = shift2
    o_ref    : (tm, Cp)  caller dtype
    """
    x = x_ref[...]
    x_bf = x.astype(jnp.bfloat16)                  # MXU feed (cast in-kernel)
    b1 = shift_ref[0:1, :]
    b2 = shift_ref[1:2, :]

    y = jnp.dot(x_bf, w1_ref[...], preferred_element_type=jnp.float32)
    y = y + b1                                     # BN scale already in w1
    y = jnp.where(y >= 0.0, y, _NEG_SLOPE * y)     # LeakyReLU; dropout = id (eval)

    y = jnp.dot(y.astype(jnp.bfloat16), w2_ref[...],
                preferred_element_type=jnp.float32)
    y = y + b2
    y = jnp.where(y >= 0.0, y, _NEG_SLOPE * y)

    o_ref[...] = (x.astype(jnp.float32) + y).astype(o_ref.dtype)  # exact f32 skip


def _cmajor_kernel(x_ref, w1_ref, w2_ref, shift_ref, o_ref):
    """PyTorch-layout column tile (channels on sublanes, L on lanes).

    x_ref    : (1, Cp, tl) caller dtype
    w1_ref   : (Cp, Cp)    bf16   a1-scaled W1  (y = w1 @ x)
    w2_ref   : (Cp, Cp)    bf16   a2-scaled W2
    shift_ref: (Cp, 2)     f32    col 0 = shift1, col 1 = shift2
    o_ref    : (1, Cp, tl) caller dtype
    """
    x = x_ref[0]                                   # (Cp, tl)
    x_bf = x.astype(jnp.bfloat16)
    b1 = shift_ref[:, 0:1]                         # (Cp, 1) broadcast along lanes
    b2 = shift_ref[:, 1:2]

    y = jnp.dot(w1_ref[...], x_bf, preferred_element_type=jnp.float32)
    y = y + b1
    y = jnp.where(y >= 0.0, y, _NEG_SLOPE * y)

    y = jnp.dot(w2_ref[...], y.astype(jnp.bfloat16),
                preferred_element_type=jnp.float32)
    y = y + b2
    y = jnp.where(y >= 0.0, y, _NEG_SLOPE * y)

    o_ref[0] = (x.astype(jnp.float32) + y).astype(o_ref.dtype)


# --------------------------------------------------------------------------
# Host-side parameter folding / tiling helpers
# --------------------------------------------------------------------------
def _fold_bn(params):
    a1 = params["bn1_gamma"] / jnp.sqrt(params["bn1_var"] + _BN_EPS)
    s1 = (params["w1_bias"] - params["bn1_mean"]) * a1 + params["bn1_beta"]
    a2 = params["bn2_gamma"] / jnp.sqrt(params["bn2_var"] + _BN_EPS)
    s2 = (params["w2_bias"] - params["bn2_mean"]) * a2 + params["bn2_beta"]
    return (a1.astype(jnp.float32), s1.astype(jnp.float32),
            a2.astype(jnp.float32), s2.astype(jnp.float32))


def _pad_weight(w, Cp):
    C = w.shape[0]
    if C == Cp:
        return w.astype(jnp.bfloat16)
    return jnp.zeros((Cp, Cp), jnp.bfloat16).at[:C, :C].set(w.astype(jnp.bfloat16))


def _prep_cmajor(params, Cp):
    C = params["w1_weight"].shape[0]
    a1, s1, a2, s2 = _fold_bn(params)
    # Fold BN scale into the out-channel rows of W (exact).
    w1 = params["w1_weight"].astype(jnp.float32) * a1[:, None]
    w2 = params["w2_weight"].astype(jnp.float32) * a2[:, None]
    shift = jnp.zeros((Cp, 2), jnp.float32)
    shift = shift.at[:C, 0].set(s1).at[:C, 1].set(s2)
    return _pad_weight(w1, Cp), _pad_weight(w2, Cp), shift


def _prep_rows(params, Cp):
    C = params["w1_weight"].shape[0]
    a1, s1, a2, s2 = _fold_bn(params)
    # y = x @ W^T: fold BN scale into the columns of W^T (== rows of W).
    w1t = (params["w1_weight"].astype(jnp.float32) * a1[:, None]).T
    w2t = (params["w2_weight"].astype(jnp.float32) * a2[:, None]).T
    shift = jnp.zeros((8, Cp), jnp.float32)
    shift = shift.at[0, :C].set(s1).at[1, :C].set(s2)
    return _pad_weight(w1t, Cp), _pad_weight(w2t, Cp), shift


def _resident_spec(block_shape, index_map, single_buffer):
    # Constant-index operands (weights / shift tables) are fetched once and never
    # re-fetched; single-buffering them halves their VMEM footprint.  Engaged only
    # when the weights are large enough to matter (v7x has 64 MiB/TC).
    if single_buffer and _HAS_BUFFERED:
        try:
            return pl.BlockSpec(block_shape, index_map,
                                pipeline_mode=pl.Buffered(1))
        except Exception:
            pass
    return pl.BlockSpec(block_shape, index_map)


def _vmem_limit_bytes(stream_bytes, resident_bytes):
    need = stream_bytes + resident_bytes
    need += need // 4                      # ~25% headroom for compiler scratch
    try:                                   # 128 MiB on v5e/v6e, 64 MiB on v7x
        cap = int(pltpu.get_tpu_info().vmem_capacity_bytes)
    except Exception:
        cap = 64 * 1024 * 1024
    return int(min(cap * 3 // 4, max(8 * 1024 * 1024, need)))


def _pick_tm(M, Cp, in_bytes, out_bytes, tm_max=512):
    # Bytes per row of streamed + in-kernel data: double-buffered x and out tiles
    # plus the f32 intermediate y / bf16 recast temporaries (~12 B/elem).
    per_row = Cp * (2 * in_bytes + 2 * out_bytes + 12)
    tm_vmem = max(8, _STREAM_VMEM_BUDGET // max(per_row, 1))
    # Aim for >= 8 grid steps so both v7x TensorCores get a pipelined stream.
    tm_steps = _round_up(_cdiv(M, 8), 8)
    tm = min(tm_max, tm_vmem, tm_steps)
    return int(max(8, tm - tm % 8))


def _pick_tl(L, N, Cp, in_bytes, out_bytes, tl_max=2048):
    per_col = Cp * (2 * in_bytes + 2 * out_bytes + 12)
    tl_vmem = max(128, _STREAM_VMEM_BUDGET // max(per_col, 1))
    Lp = _round_up(L, 128)
    tl = min(tl_max, tl_vmem, Lp)
    tl = max(128, tl - tl % 128)
    # Shrink (in multiples of 128) until there are >= 8 total grid steps, if possible.
    while tl > 128 and N * _cdiv(Lp, tl) < 8:
        tl -= 128
    return int(tl)


# --------------------------------------------------------------------------
# Public entry points
# --------------------------------------------------------------------------
def linear_block_rows(x2d, params, *, tm=None):
    """Residual block on a channels-last (M, C) activation slab (C on lanes)."""
    M, C = x2d.shape
    Cp = max(128, _round_up(C, 128))
    in_bytes = jnp.dtype(x2d.dtype).itemsize
    out_bytes = in_bytes                           # output matches caller dtype

    if tm is None:
        tm = _pick_tm(M, Cp, in_bytes, out_bytes)
    tm = max(8, int(tm) - int(tm) % 8)
    Mp = _round_up(M, tm)

    w1t, w2t, shift = _prep_rows(params, Cp)

    # Feed the caller's slab directly when it is already tile-aligned: no extra
    # host cast/pad pass over the activations (the kernel casts to bf16 itself).
    if C != Cp or M != Mp:
        x_in = jnp.zeros((Mp, Cp), x2d.dtype).at[:M, :C].set(x2d)
    else:
        x_in = x2d

    single_w = Cp >= 1024
    w_bufs = 1 if (single_w and _HAS_BUFFERED) else 2
    stream = tm * Cp * (2 * in_bytes + 2 * out_bytes + 12)
    resident = w_bufs * (2 * Cp * Cp * 2 + 8 * Cp * 4)

    out = pl.pallas_call(
        _rows_kernel,
        out_shape=jax.ShapeDtypeStruct((Mp, Cp), x2d.dtype),
        grid_spec=pltpu.PrefetchScalarGridSpec(
            num_scalar_prefetch=0,
            grid=(Mp // tm,),
            in_specs=[
                pl.BlockSpec((tm, Cp), lambda i: (i, 0)),               # x rows
                _resident_spec((Cp, Cp), lambda i: (0, 0), single_w),   # a1*W1^T
                _resident_spec((Cp, Cp), lambda i: (0, 0), single_w),   # a2*W2^T
                _resident_spec((8, Cp), lambda i: (0, 0), single_w),    # shifts
            ],
            out_specs=pl.BlockSpec((tm, Cp), lambda i: (i, 0)),
        ),
        compiler_params=pltpu.CompilerParams(
            dimension_semantics=("parallel",),
            vmem_limit_bytes=_vmem_limit_bytes(stream, resident)),
    )(x_in, w1t, w2t, shift)

    if C != Cp or M != Mp:
        out = out[:M, :C]
    return out


def linear_block_forward(x, params, *, tl=None):
    """PyTorch-layout entry point: x is (N, C, L) exactly like the nn.Module.

    Works directly on (Cp, tl) column tiles (out = W @ x, channels on the
    sublane axis), so PyTorch-layout callers pay no (N,C,L) <-> (M,C)
    transpose round-trip over HBM.
    """
    N, C, L = x.shape
    Cp = max(128, _round_up(C, 128))
    in_bytes = jnp.dtype(x.dtype).itemsize
    out_bytes = in_bytes

    if tl is None:
        tl = _pick_tl(L, N, Cp, in_bytes, out_bytes)
    tl = max(128, int(tl) - int(tl) % 128)
    Lt = _round_up(L, tl)

    w1, w2, shift = _prep_cmajor(params, Cp)

    if C != Cp or L != Lt:
        x_in = jnp.zeros((N, Cp, Lt), x.dtype).at[:, :C, :L].set(x)
    else:
        x_in = x

    # TODO(synk): for Cp >~ 2-3K the two resident (Cp, Cp) weights no longer fit
    # v7x's 64 MiB/TC even single-buffered; add an output-channel grid axis
    # (N-tiling + K-accumulation for the second matmul) for that regime.
    single_w = Cp >= 1024
    w_bufs = 1 if (single_w and _HAS_BUFFERED) else 2
    stream = tl * Cp * (2 * in_bytes + 2 * out_bytes + 12)
    resident = w_bufs * (2 * Cp * Cp * 2 + Cp * 2 * 4)

    out = pl.pallas_call(
        _cmajor_kernel,
        out_shape=jax.ShapeDtypeStruct((N, Cp, Lt), x.dtype),
        grid_spec=pltpu.PrefetchScalarGridSpec(
            num_scalar_prefetch=0,
            grid=(N, Lt // tl),
            in_specs=[
                pl.BlockSpec((1, Cp, tl), lambda n, j: (n, 0, j)),         # x cols
                _resident_spec((Cp, Cp), lambda n, j: (0, 0), single_w),   # a1*W1
                _resident_spec((Cp, Cp), lambda n, j: (0, 0), single_w),   # a2*W2
                _resident_spec((Cp, 2), lambda n, j: (0, 0), single_w),    # shifts
            ],
            out_specs=pl.BlockSpec((1, Cp, tl), lambda n, j: (n, 0, j)),
        ),
        compiler_params=pltpu.CompilerParams(
            dimension_semantics=("parallel", "parallel"),
            vmem_limit_bytes=_vmem_limit_bytes(stream, resident)),
    )(x_in, w1, w2, shift)

    if C != Cp or L != Lt:
        out = out[:, :C, :L]
    return out


# --------------------------------------------------------------------------
# Pure-JAX reference (eval-mode PyTorch module) + parameter construction
# --------------------------------------------------------------------------
def _reference_forward(x, params):
    leaky = lambda t: jnp.where(t >= 0.0, t, _NEG_SLOPE * t)

    def conv1(y, w, b):  # (N, C, L), w (O, I)
        return jnp.einsum("oi,nil->nol", w, y) + b[None, :, None]

    def bn(y, g, be, m, v):
        return (y - m[None, :, None]) / jnp.sqrt(v[None, :, None] + _BN_EPS) \
            * g[None, :, None] + be[None, :, None]

    y = conv1(x, params["w1_weight"], params["w1_bias"])
    y = bn(y, params["bn1_gamma"], params["bn1_beta"],
           params["bn1_mean"], params["bn1_var"])
    y = leaky(y)
    y = conv1(y, params["w2_weight"], params["w2_bias"])
    y = bn(y, params["bn2_gamma"], params["bn2_beta"],
           params["bn2_mean"], params["bn2_var"])
    y = leaky(y)
    return x + y


def make_params(key, C):
    ks = jax.random.split(key, 8)
    scale = 1.0 / jnp.sqrt(C)
    return {
        "w1_weight": jax.random.uniform(ks[0], (C, C), jnp.float32, -scale, scale),
        "w1_bias":   jax.random.uniform(ks[1], (C,), jnp.float32, -scale, scale),
        "bn1_gamma": jnp.ones((C,), jnp.float32),
        "bn1_beta":  jnp.zeros((C,), jnp.float32),
        "bn1_mean":  0.01 * jax.random.normal(ks[2], (C,), jnp.float32),
        "bn1_var":   jnp.ones((C,), jnp.float32)
                     + 0.01 * jax.random.uniform(ks[3], (C,), jnp.float32),
        "w2_weight": jax.random.uniform(ks[4], (C, C), jnp.float32, -scale, scale),
        "w2_bias":   jax.random.uniform(ks[5], (C,), jnp.float32, -scale, scale),
        "bn2_gamma": jnp.ones((C,), jnp.float32),
        "bn2_beta":  jnp.zeros((C,), jnp.float32),
        "bn2_mean":  0.01 * jax.random.normal(ks[6], (C,), jnp.float32),
        "bn2_var":   jnp.ones((C,), jnp.float32)
                     + 0.01 * jax.random.uniform(ks[7], (C,), jnp.float32),
    }


if __name__ == "__main__":
    key = jax.random.PRNGKey(0)
    k_x, k_p = jax.random.split(key)

    # batch=2, linear_size=128 channels, sequence length 256.
    N, C, L = 2, 128, 256
    x = jax.random.normal(k_x, (N, C, L), jnp.float32)
    params = make_params(k_p, C)

    ref = _reference_forward(x, params)

    # PyTorch-layout entry point (channel-major kernel, no transposes).
    out = jax.block_until_ready(jax.jit(linear_block_forward)(x, params))
    assert out.shape == (N, C, L) and out.dtype == x.dtype
    err = float(jnp.max(jnp.abs(out - ref)))
    assert jnp.allclose(out, ref, atol=5e-2, rtol=5e-2), \
        f"cmajor kernel mismatch vs reference (max abs err {err})"

    # Channels-last entry point (row-major kernel) on the same data.
    x2d = jnp.transpose(x, (0, 2, 1)).reshape(N * L, C)
    ref2d = jnp.transpose(ref, (0, 2, 1)).reshape(N * L, C)
    out2d = jax.block_until_ready(jax.jit(linear_block_rows)(x2d, params))
    assert out2d.shape == (N * L, C) and out2d.dtype == x2d.dtype
    err2 = float(jnp.max(jnp.abs(out2d - ref2d)))
    assert jnp.allclose(out2d, ref2d, atol=5e-2, rtol=5e-2), \
        f"rows kernel mismatch vs reference (max abs err {err2})"

    print("KERNEL_OK")
</pallas_src>

<mosaic_0001>
module attributes {stable_mosaic.version = 11 : i64} {
  func.func @_cmajor_kernel(%arg0: i32, %arg1: i32, %arg2: memref<1x128x128xf32, #tpu.memory_space<vmem>>, %arg3: memref<128x128xbf16, #tpu.memory_space<vmem>>, %arg4: memref<128x128xbf16, #tpu.memory_space<vmem>>, %arg5: memref<128x2xf32, #tpu.memory_space<vmem>>, %arg6: memref<1x128x128xf32, #tpu.memory_space<vmem>>) attributes {dimension_semantics = [#tpu.dimension_semantics<parallel>, #tpu.dimension_semantics<parallel>], iteration_bounds = array<i64: 2, 2>, scalar_prefetch = 0 : i64, scratch_operands = 0 : i64, tpu.core_type = #tpu.core_type<tc>, window_params = [{transform_indices = @transform_0, window_bounds = array<i64: 1, 128, 128>}, {pipeline_mode = #tpu.pipeline_mode<synchronous>, transform_indices = @transform_1, window_bounds = array<i64: 128, 128>}, {pipeline_mode = #tpu.pipeline_mode<synchronous>, transform_indices = @transform_2, window_bounds = array<i64: 128, 128>}, {pipeline_mode = #tpu.pipeline_mode<synchronous>, transform_indices = @transform_3, window_bounds = array<i64: 128, 2>}, {transform_indices = @transform_4, window_bounds = array<i64: 1, 128, 128>}]} {
    %c0 = arith.constant 0 : index
    %c0_0 = arith.constant 0 : index
    %c0_1 = arith.constant 0 : index
    %0 = vector.load %arg2[%c0, %c0_0, %c0_1] : memref<1x128x128xf32, #tpu.memory_space<vmem>>, vector<1x128x128xf32>
    %1 = vector.shape_cast %0 : vector<1x128x128xf32> to vector<128x128xf32>
    %2 = arith.truncf %1 : vector<128x128xf32> to vector<128x128xbf16>
    %c0_2 = arith.constant 0 : index
    %c0_3 = arith.constant 0 : index
    %3 = vector.load %arg5[%c0_2, %c0_3] : memref<128x2xf32, #tpu.memory_space<vmem>>, vector<128x1xf32>
    %c0_4 = arith.constant 0 : index
    %c1 = arith.constant 1 : index
    %4 = vector.load %arg5[%c0_4, %c1] : memref<128x2xf32, #tpu.memory_space<vmem>>, vector<128x1xf32>
    %c0_5 = arith.constant 0 : index
    %c0_6 = arith.constant 0 : index
    %5 = vector.load %arg3[%c0_5, %c0_6] : memref<128x128xbf16, #tpu.memory_space<vmem>>, vector<128x128xbf16>
    %cst = arith.constant dense<0.000000e+00> : vector<128x128xf32>
    %6 = tpu.matmul %5, %2, %cst {dimension_numbers = #tpu.dot_dimension_numbers<[1], [0], [0], [1], [0, 0, 1, 1], [], []>} : vector<128x128xbf16>, vector<128x128xbf16>, vector<128x128xf32> -> vector<128x128xf32>
    %7 = vector.broadcast %3 : vector<128x1xf32> to vector<128x128xf32>
    %8 = arith.addf %6, %7 : vector<128x128xf32>
    %cst_7 = arith.constant 0.000000e+00 : f32
    %9 = vector.broadcast %cst_7 : f32 to vector<128x128xf32>
    %10 = arith.cmpf oge, %8, %9 : vector<128x128xf32>
    %cst_8 = arith.constant 2.000000e-01 : f32
    %11 = vector.broadcast %cst_8 : f32 to vector<128x128xf32>
    %12 = arith.mulf %11, %8 : vector<128x128xf32>
    %13 = arith.select %10, %8, %12 : vector<128x128xi1>, vector<128x128xf32>
    %c0_9 = arith.constant 0 : index
    %c0_10 = arith.constant 0 : index
    %14 = vector.load %arg4[%c0_9, %c0_10] : memref<128x128xbf16, #tpu.memory_space<vmem>>, vector<128x128xbf16>
    %15 = arith.truncf %13 : vector<128x128xf32> to vector<128x128xbf16>
    %cst_11 = arith.constant dense<0.000000e+00> : vector<128x128xf32>
    %16 = tpu.matmul %14, %15, %cst_11 {dimension_numbers = #tpu.dot_dimension_numbers<[1], [0], [0], [1], [0, 0, 1, 1], [], []>} : vector<128x128xbf16>, vector<128x128xbf16>, vector<128x128xf32> -> vector<128x128xf32>
    %17 = vector.broadcast %4 : vector<128x1xf32> to vector<128x128xf32>
    %18 = arith.addf %16, %17 : vector<128x128xf32>
    %cst_12 = arith.constant 0.000000e+00 : f32
    %19 = vector.broadcast %cst_12 : f32 to vector<128x128xf32>
    %20 = arith.cmpf oge, %18, %19 : vector<128x128xf32>
    %cst_13 = arith.constant 2.000000e-01 : f32
    %21 = vector.broadcast %cst_13 : f32 to vector<128x128xf32>
    %22 = arith.mulf %21, %18 : vector<128x128xf32>
    %23 = arith.select %20, %18, %22 : vector<128x128xi1>, vector<128x128xf32>
    %24 = arith.addf %1, %23 : vector<128x128xf32>
    %c0_14 = arith.constant 0 : index
    %c0_15 = arith.constant 0 : index
    %c0_16 = arith.constant 0 : index
    %25 = vector.load %arg6[%c0_14, %c0_15, %c0_16] : memref<1x128x128xf32, #tpu.memory_space<vmem>>, vector<1x128x128xf32>
    %26 = vector.shape_cast %25 : vector<1x128x128xf32> to vector<128x128xf32>
    %27 = vector.shape_cast %24 : vector<128x128xf32> to vector<1x128x128xf32>
    tpu.vector_store %arg6[%c0_14, %c0_15, %c0_16], %27 {strides = array<i32>} : memref<1x128x128xf32, #tpu.memory_space<vmem>>, vector<1x128x128xf32>,
    return
  }
  func.func @transform_0(%arg0: i32, %arg1: i32) -> (i32, i32, i32) {
    %c0_i32 = arith.constant 0 : i32
    %c0_i32_0 = arith.constant 0 : i32
    return %arg0, %c0_i32, %arg1 : i32, i32, i32
  }
  func.func @transform_1(%arg0: i32, %arg1: i32) -> (i32, i32) {
    %c0_i32 = arith.constant 0 : i32
    %c0_i32_0 = arith.constant 0 : i32
    %c0_i32_1 = arith.constant 0 : i32
    return %c0_i32, %c0_i32_0 : i32, i32
  }
  func.func @transform_2(%arg0: i32, %arg1: i32) -> (i32, i32) {
    %c0_i32 = arith.constant 0 : i32
    %c0_i32_0 = arith.constant 0 : i32
    %c0_i32_1 = arith.constant 0 : i32
    return %c0_i32, %c0_i32_0 : i32, i32
  }
  func.func @transform_3(%arg0: i32, %arg1: i32) -> (i32, i32) {
    %c0_i32 = arith.constant 0 : i32
    %c0_i32_0 = arith.constant 0 : i32
    %c0_i32_1 = arith.constant 0 : i32
    return %c0_i32, %c0_i32_0 : i32, i32
  }
  func.func @transform_4(%arg0: i32, %arg1: i32) -> (i32, i32, i32) {
    %c0_i32 = arith.constant 0 : i32
    %c0_i32_0 = arith.constant 0 : i32
    return %arg0, %c0_i32, %arg1 : i32, i32, i32
  }
}

</mosaic_0001>

<bundles_post_ra>
// kernel: linear_block_forward.1
= control target key start
LH: loop header
LB: loop body
LE: loop exit
PB: predicated region body
PF: predicated region fallthrough
CT: control target
= control target key end

     0   :  { %9 = vsyncpa [#allocation4], 0  ;;  %s1712_s0 = inlined_call_operand.vmem [shape: f32[2,128,256], index: 0, kind: input, shape index: {}]   ;;  %s1713_s1 = inlined_call_operand.vmem [shape: bf16[128,128], index: 1, kind: input, shape index: {}]   ;;  %s1714_s2 = inlined_call_operand.vmem [shape: bf16[128,128], index: 2, kind: input, shape index: {}]   ;;  %s1715_s3 = inlined_call_operand.vmem [shape: f32[128,2], index: 3, kind: input, shape index: {}]   ;;  %s1716_s4 = inlined_call_operand.hbm [shape: f32[2,128,256], index: 4, kind: output, shape index: {}]  }
   0x1   :  { %11 = vsyncpa [#allocation4 + $0x1], 0  ;;  %s1274_s15 = smov 0   ;;  %s1276_s16 = smov 0  }
   0x2   :  { %s1278_s17 = smov 0   ;;  %s1280_s18 = smov 0  }
   0x3   :  { %s1282_s19 = smov 0   ;;  %s1284_s20 = smov 0  }
   0x4   :  { %s1286_s21 = smov 0   ;;  %s1288_s22 = smov 0  }
   0x5 LB: > { %s955_s23 = sadd.s32 4294967295, %s1242_s22   ;;  %s956_s24 = sadd.s32 4294967294, %s1242_s22   ;;  %s1242_s22 = sphi %s1288_s22, %s17_s22   ;;  %s1238_s21 = sphi %s1286_s21, %s1738_s21   ;;  %s1234_s20 = sphi %s1284_s20, %s1737_s20   ;;  %s1230_s19 = sphi %s1282_s19, %s1736_s19   ;;  %s1226_s18 = sphi %s1280_s18, %s1735_s18   ;;  %s1222_s17 = sphi %s1278_s17, %s1734_s17   ;;  %s1218_s16 = sphi %s1276_s16, %s1733_s16   ;;  %s1214_s15 = sphi %s1274_s15, %s1732_s15  }
   0x6   : > { %s26_s25 = sadd.s32 1, %s1234_s20  ;;  %s29_s26 = sadd.s32 1, %s1238_s21 }
   0x7   : > { %p27_p0 = scmp.ge.s32.totalorder %s26_s25, 2  ;;  %p45_p1 = scmp.ne.s32.totalorder %s1222_s17, %s1218_s16 }
   0x8   : > { %p46_p2 = scmp.eq.s32.totalorder %s1242_s22, 0  ;;  %p140_p5 = scmp.eq.s32.totalorder %s955_s23, 3 }
   0x9   : > { %s1740_s25 = smov (%p27_p0, %s26_s25), 0  ;;  %s1742_s26 = smov (!%p27_p0, %s29_s26), %s1238_s21 }
   0xa   : > { %s34_s27 = ssub.s32 %s1234_s20, %s1740_s25  ;;  %p1326_p3 = por %p46_p2, %p45_p1 }
   0xb   : > { %p31_p4 = scmp.ge.s32.totalorder %s1742_s26, 2  ;;  %p145_p6 = scmp.ne.s32.totalorder %s1218_s16, %s1214_s15 }
   0xc   : > { %p146_p7 = scmp.eq.s32.totalorder %s956_s24, 3  ;;  %p1334_p8 = por %p140_p5, %p45_p1 }
   0xd   : > { %s1744_s26 = smov (%p31_p4, %s1742_s26), 0  ;;  %s38_s7 = sadd.s32 1, %s1222_s17 }
   0xe   : > { %p1338_p9 = por %p146_p7, %p145_p6  ;;  %s33_s5 = ssub.s32 %s1238_s21, %s1744_s26 }
   0xf   : > { %s35_s6 = sor.u32 %s34_s27, %s33_s5  ;;  %p958_p11 = scmp.ge.s32.totalorder %s1242_s22, 4 }
  0x10   : > { %p36_p10 = scmp.eq.s32.totalorder %s35_s6, 0 }
  0x11   : > { %171 = sbr.rel (%p958_p11) target bundleno = 44 (0x2c), region = 28 }
  0x12   : > { %s1346_s8 = scalar_select %p36_p10, %s1222_s17, %s38_s7  }
  0x16   : > { %174 = sbr.rel (!%p1326_p3) target bundleno = 44 (0x2c), region = 32  ;;  %s176_s9 = sand.u32 (%p1326_p3), 1, %s1222_s17  }
  0x17   : > { %s960_s10 = sshll.u32 (%p1326_p3), %s1238_s21, 5  ;;  %s959_s11 = sshll.u32 (%p1326_p3), %s176_s9, 7 }
  0x18   : > { %s180_s12 = sadd.s32 (%p1326_p3), %s1234_s20, %s960_s10  ;;  %s178_s27 = scalar_lea.vmem (%p1326_p3), [#allocation2], %s959_s11 }
  0x19   : > { %s961_s13 = sshll.u32 (%p1326_p3), %s180_s12, 3 }
  0x1a   : > { %s1357_s24 = scalar_lea.vmem (%p1326_p3), %s1712_s0, %s961_s13 }
  0x1b   : > { %v241_v0 = vld [vmem:[%s1357_s24] sm:$0xff]  ;;  %v243_v1 = vld [vmem:[%s1357_s24 + $0x10] sm:$0xff] }
  0x1c   : > { %v245_v2 = vld [vmem:[%s1357_s24 + $0x20] sm:$0xff]  ;;  %242 = vst [vmem:[%s178_s27] sm:$0xff] %v241_v0  ;;  %v247_v3 = vld [vmem:[%s1357_s24 + $0x30] sm:$0xff] }
  0x1d   : > { %244 = vst [vmem:[%s178_s27 + $0x8] sm:$0xff] %v243_v1  ;;  %v249_v4 = vld [vmem:[%s1357_s24 + $0x40] sm:$0xff]  ;;  %v251_v5 = vld [vmem:[%s1357_s24 + $0x50] sm:$0xff] }
  0x1e   : > { %246 = vst [vmem:[%s178_s27 + $0x10] sm:$0xff] %v245_v2  ;;  %v253_v6 = vld [vmem:[%s1357_s24 + $0x60] sm:$0xff]  ;;  %v255_v7 = vld [vmem:[%s1357_s24 + $0x70] sm:$0xff] }
  0x1f   : > { %248 = vst [vmem:[%s178_s27 + $0x18] sm:$0xff] %v247_v3  ;;  %v257_v8 = vld [vmem:[%s1357_s24 + $0x80] sm:$0xff]  ;;  %v259_v9 = vld [vmem:[%s1357_s24 + $0x90] sm:$0xff] }
  0x20   : > { %250 = vst [vmem:[%s178_s27 + $0x20] sm:$0xff] %v249_v4  ;;  %v261_v10 = vld [vmem:[%s1357_s24 + $0xa0] sm:$0xff]  ;;  %v263_v11 = vld [vmem:[%s1357_s24 + $0xb0] sm:$0xff] }
  0x21   : > { %252 = vst [vmem:[%s178_s27 + $0x28] sm:$0xff] %v251_v5  ;;  %v265_v12 = vld [vmem:[%s1357_s24 + $0xc0] sm:$0xff]  ;;  %v267_v13 = vld [vmem:[%s1357_s24 + $0xd0] sm:$0xff] }
  0x22   : > { %254 = vst [vmem:[%s178_s27 + $0x30] sm:$0xff] %v253_v6  ;;  %v269_v14 = vld [vmem:[%s1357_s24 + $0xe0] sm:$0xff]  ;;  %v271_v15 = vld [vmem:[%s1357_s24 + $0xf0] sm:$0xff] }
  0x23   : > { %256 = vst [vmem:[%s178_s27 + $0x38] sm:$0xff] %v255_v7 }
  0x24   : > { %258 = vst [vmem:[%s178_s27 + $0x40] sm:$0xff] %v257_v8 }
  0x25   : > { %260 = vst [vmem:[%s178_s27 + $0x48] sm:$0xff] %v259_v9 }
  0x26   : > { %262 = vst [vmem:[%s178_s27 + $0x50] sm:$0xff] %v261_v10 }
  0x27   : > { %264 = vst [vmem:[%s178_s27 + $0x58] sm:$0xff] %v263_v11 }
  0x28   : > { %266 = vst [vmem:[%s178_s27 + $0x60] sm:$0xff] %v265_v12 }
  0x29   : > { %268 = vst [vmem:[%s178_s27 + $0x68] sm:$0xff] %v267_v13 }
  0x2a   : > { %270 = vst [vmem:[%s178_s27 + $0x70] sm:$0xff] %v269_v14 }
  0x2b   : > { %272 = vst [vmem:[%s178_s27 + $0x78] sm:$0xff] %v271_v15 }
  0x2c PF: > { %p962_p12 = scmp.ge.s32.totalorder %s1242_s22, 1  ;;  %p277_p13 = scmp.lt.s32.totalorder %s1242_s22, 5 }
  0x2e   : > { %p278_p0 = pnand %p962_p12, %p277_p13 }
  0x30   : > { %281 = sbr.rel (%p278_p0) target bundleno = 516 (0x204), region = 70 }
  0x35   : > { %s284_s28 = sand.u32 1, %s1218_s16   ;;  %v1381_v16 = vld [vmem:[%s1715_s3 + $0x70] sm:$0xff]  ;;  %v1244_v17 = vmov 0   ;;  %v1416_v26 = vld [vmem:[%s1715_s3 + $0x78] sm:$0xff]  ;;  %v1421_v27 = vld [vmem:[%s1715_s3 + $0x60] sm:$0xff] }
  0x36   : > { %s1385_s7 = sshll.u32 %s284_s28, 7  ;;  %1142 = vset.pattern.permute.xlu0 %v1244_v17  ;;  %1143 = vset.pattern.permute.xlu1 %v1244_v17  ;;  %v1444_v34 = vld [vmem:[%s1715_s3 + $0x40] sm:$0xff]  ;;  %v1458_v38 = vld [vmem:[%s1715_s3 + $0x68] sm:$0xff]  ;;  %v1463_v39 = vld [vmem:[%s1715_s3 + $0x50] sm:$0xff]  ;;  %s856_s13 = scalar_lea.sflag [#allocation4], %s284_s28 }
  0x37   : > { %437 = vperm.xlu0 %1142, %v1381_v16   ;;  %1144 = vset.pattern.permute.xlu2 %v1244_v17  ;;  %s1389_s9 = scalar_lea.vmem [#allocation2], %s1385_s7  ;;  %v1478_v43 = vld [vmem:[%s1715_s3 + $0x38] sm:$0xff]  ;;  %v1492_v47 = vld [vmem:[%s1715_s3 + $0x48] sm:$0xff]  ;;  %v1506_v50 = vld [vmem:[%s1715_s3 + $0x10] sm:$0xff]  ;;  %s1627_s27 = scalar_lea.vmem [#allocation3], %s1385_s7 }
  0x38   : > { %v1392_v18 = vld [vmem:[%s1389_s9 + $0x70] sm:$0xff]  ;;  %v1395_v19 = vld [vmem:[%s1389_s9 + $0x78] sm:$0xff]  ;;  %v1398_v20 = vld [vmem:[%s1389_s9 + $0x60] sm:$0xff]  ;;  %427 = vperm.xlu1 %1143, %v1421_v27   ;;  %417 = vperm.xlu2 %1144, %v1463_v39   ;;  %s1030_s7 = sshll.u32 %s1230_s19, 5  ;;  %s869_s11 = sshll.u32 %s1627_s27, 4  ;;  %s870_s11 = int_to_ptr.vmem [resolvable:$true] %s869_s11 }
  0x39   : > { %1724 = vst [vmem:[#allocation6_spill] sm:$0xff] %v1392_v18  ;;  %v332_v21 = vpack.c.bf16 %v1395_v19, %v1392_v18  ;;  %v1403_v22 = vld [vmem:[%s1389_s9 + $0x68] sm:$0xff]  ;;  %v1408_v24 = vld [vmem:[%s1389_s9 + $0x50] sm:$0xff]  ;;  %v1411_v25 = vld [vmem:[%s1389_s9 + $0x58] sm:$0xff]  ;;  %s866_s5 = sadd.s32 %s1226_s18, %s1030_s7  ;;  %s1168_s7 = scalar_lea.hbm %s1716_s4, 512 }
  0x3a   : > { %1725 = vst [vmem:[#allocation7_spill] sm:$0xff] %v1395_v19  ;;  %v331_v23 = vpack.c.bf16 %v1403_v22, %v1398_v20  ;;  %v330_v28 = vpack.c.bf16 %v1411_v25, %v1408_v24  ;;  %v1426_v29 = vld [vmem:[%s1389_s9 + $0x40] sm:$0xff]  ;;  %v1429_v30 = vld [vmem:[%s1389_s9 + $0x48] sm:$0xff]  ;;  %v1436_v32 = vld [vmem:[%s1389_s9 + $0x30] sm:$0xff]  ;;  %s1031_s6 = sshll.u32 %s866_s5, 3 }
  0x3b   : > { %493 = vmatpush.bf16.msra.mxu0 %v332_v21  ;;  %1050 = vmatpush.bf16.msra.mxu2 %v332_v21  ;;  %v329_v31 = vpack.c.bf16 %v1429_v30, %v1426_v29  ;;  %1726 = vst [vmem:[#allocation8_spill] sm:$0xff] %v1436_v32  ;;  %v1439_v33 = vld [vmem:[%s1389_s9 + $0x38] sm:$0xff]  ;;  %v1449_v36 = vld [vmem:[%s1389_s9 + $0x20] sm:$0xff]  ;;  %v1452_v37 = vld [vmem:[%s1389_s9 + $0x28] sm:$0xff]  ;;  %s868_s18 = scalar_lea.hbm %s1716_s4, %s1031_s6 }
  0x3c   : > { %1727 = vst [vmem:[#allocation9_spill] sm:$0xff] %v1439_v33  ;;  %v328_v35 = vpack.c.bf16 %v1439_v33, %v1436_v32  ;;  %v327_v40 = vpack.c.bf16 %v1452_v37, %v1449_v36  ;;  %v1468_v41 = vld [vmem:[%s1389_s9 + $0x10] sm:$0xff]  ;;  %v1471_v42 = vld [vmem:[%s1389_s9 + $0x18] sm:$0xff]  ;;  %v1483_v45 = vld [vmem:[%s1389_s9] sm:$0xff]  ;;  %s871_s12 = sshll.u32 %s868_s18, 4  ;;  %s872_s12 = int_to_ptr.hbm [resolvable:$true] %s871_s12 }
  0x3d   : > { %v326_v44 = vpack.c.bf16 %v1471_v42, %v1468_v41  ;;  %v1486_v46 = vld [vmem:[%s1389_s9 + $0x8] sm:$0xff]  ;;  %v1497_v48 = vld [vmem:[%s1715_s3 + $0x58] sm:$0xff]  ;;  %v1034_v51 = vld [vmem:[%s1713_s1] sm:$0xff]  ;;  %s1162_s14 = sshra.s32 %s872_s12, 4  ;;  %s1163_s14 = int_to_ptr.hbm [resolvable:$true] %s1162_s14 }
  0x3e   : > { %v325_v49 = vpack.c.bf16 %v1486_v46, %v1483_v45  ;;  %v1038_v52 = vld [vmem:[%s1713_s1 + $0x20] sm:$0xff]  ;;  %v1518_v53 = vld [vmem:[%s1715_s3 + $0x30] sm:$0xff]  ;;  %v334_v55 = vld [vmem:[%s1715_s3 + $0x8] sm:$0xff]  ;;  %s1164_s23 = scalar_lea.hbm %s1163_s14, 128  ;;  %p1169_p4 = scmp.lt.s32.totalorder %s1163_s14, %s1716_s4 }
  0x3f   : > { %494 = vmatpush.bf16.msra.mxu0 %v331_v23  ;;  %1051 = vmatpush.bf16.msra.mxu2 %v331_v23  ;;  %v1523_v54 = vld [vmem:[%s1715_s3 + $0x20] sm:$0xff]  ;;  %v1533_v56 = vld [vmem:[%s1715_s3 + $0x28] sm:$0xff]  ;;  %v1538_v57 = vld [vmem:[%s1715_s3 + $0x18] sm:$0xff]  ;;  %p1165_p1 = scmp.ne.s32.totalorder %s1163_s14, %s1164_s23  ;;  %p1170_p5 = scmp.lt.s32.totalorder %s1168_s7, %s1164_s23 }
  0x40   : > { %442 = vperm.xlu0 %1142, %v1416_v26   ;;  %432 = vperm.xlu1 %1143, %v1458_v38   ;;  %v1035_v58 = vld [vmem:[%s1713_s1 + $0x8] sm:$0xff]  ;;  %v333_v60 = vld [vmem:[%s1715_s3] sm:$0xff]  ;;  %v1036_v61 = vld [vmem:[%s1713_s1 + $0x10] sm:$0xff] }
  0x41   : > { %422 = vperm.xlu2 %1144, %v1497_v48   ;;  %v1039_v59 = vld [vmem:[%s1713_s1 + $0x28] sm:$0xff]  ;;  %v1040_v62 = vld [vmem:[%s1713_s1 + $0x30] sm:$0xff]  ;;  %v1037_v63 = vld [vmem:[%s1713_s1 + $0x18] sm:$0xff]  ;;  %p1166_p2 = pnand %p1165_p1, %p1334_p8  ;;  %p1171_p6 = por %p1170_p5, %p1169_p4 }
  0x42   : > { %v1041_v0 = vld [vmem:[%s1713_s1 + $0x38] sm:$0xff] }
  0x43   : > { %495 = vmatpush.bf16.msra.mxu0 %v330_v28  ;;  %1052 = vmatpush.bf16.msra.mxu2 %v330_v28  ;;  %p1167_p3 = pneg %p1166_p2 }
  0x45   : > { %p1172_p7 = pnand %p1171_p6, %p1167_p3 }
  0x47   : > { %496 = vmatpush.bf16.msra.mxu0 %v329_v31  ;;  %1053 = vmatpush.bf16.msra.mxu2 %v329_v31 }
  0x48   : > { %407 = vperm.xlu0 %1142, %v1444_v34   ;;  %412 = vperm.xlu1 %1143, %v1492_v47  }
  0x49   : > { %397 = vperm.xlu2 %1144, %v1518_v53  }
  0x4b   : > { %497 = vmatpush.bf16.msra.mxu0 %v328_v35  ;;  %1054 = vmatpush.bf16.msra.mxu2 %v328_v35 }
  0x4f   : > { %498 = vmatpush.bf16.msra.mxu0 %v327_v40  ;;  %1055 = vmatpush.bf16.msra.mxu2 %v327_v40 }
  0x50   : > { %402 = vperm.xlu0 %1142, %v1478_v43   ;;  %387 = vperm.xlu1 %1143, %v1523_v54  }
  0x51   : > { %392 = vperm.xlu2 %1144, %v1533_v56  }
  0x53   : > { %499 = vmatpush.bf16.msra.mxu0 %v326_v44  ;;  %1056 = vmatpush.bf16.msra.mxu2 %v326_v44  ;;  %v1245_v44 = vmov 1  }
  0x57   : > { %500 = vmatpush.bf16.msra.mxu0 %v325_v49  ;;  %1057 = vmatpush.bf16.msra.mxu2 %v325_v49 }
  0x58   : > { %377 = vperm.xlu0 %1142, %v1506_v50   ;;  %382 = vperm.xlu1 %1143, %v1538_v57  }
  0x59   : > { %367 = vperm.xlu2 %1144, %v333_v60  }
  0x5a   : > { %501 = vmatmul.bf16.vlgmr.msra.gmra.mxu0 %v1034_v51  ;;  %521 = vmatmul.bf16.vlgmr.msra.gmra.mxu2 %v1038_v52 }
  0x60   : > { %372 = vperm.xlu0 %1142, %v334_v55   ;;  %1145 = vset.pattern.permute.xlu1 %v1245_v44 }
  0x61   : > { %615 = vperm.xlu1 %1145, %v333_v60   ;;  %1146 = vset.pattern.permute.xlu2 %v1245_v44 }
  0x62   : > { %619 = vperm.xlu2 %1146, %v334_v55  }
  0x68   : > { %1147 = vset.pattern.permute.xlu0 %v1245_v44 }
  0x69   : > { %623 = vperm.xlu0 %1147, %v1506_v50   ;;  %627 = vperm.xlu1 %1145, %v1538_v57  }
  0x6a   : > { %506 = vmatmul.bf16.gmra.mxu0 %v1035_v58  ;;  %526 = vmatmul.bf16.gmra.mxu2 %v1039_v59 }
  0x6b   : > { %631 = vperm.xlu2 %1146, %v1523_v54  }
  0x71   : > { %643 = vperm.xlu0 %1147, %v1478_v43   ;;  %635 = vperm.xlu1 %1145, %v1533_v56  }
  0x73   : > { %639 = vperm.xlu2 %1146, %v1518_v53  }
  0x79   : > { %655 = vperm.xlu0 %1147, %v1463_v39   ;;  %647 = vperm.xlu1 %1145, %v1444_v34  }
  0x7a   : > { %511 = vmatmul.bf16.gmra.mxu0 %v1036_v61  ;;  %531 = vmatmul.bf16.gmra.mxu2 %v1040_v62 }
  0x7b   : > { %651 = vperm.xlu2 %1146, %v1492_v47  }
  0x81   : > { %667 = vperm.xlu0 %1147, %v1458_v38   ;;  %659 = vperm.xlu1 %1145, %v1497_v48   ;;  %v1047_v48 = vld [vmem:[%s1714_s2 + $0x28] sm:$0xff] }
  0x83   : > { %663 = vperm.xlu2 %1146, %v1421_v27   ;;  %v1043_v27 = vld [vmem:[%s1714_s2 + $0x8] sm:$0xff] }
  0x89   : > { %671 = vperm.xlu1 %1145, %v1381_v16   ;;  %v1048_v16 = vld [vmem:[%s1714_s2 + $0x30] sm:$0xff] }
  0x8a   : > { %516 = vmatmul.bf16.gmra.mxu0 %v1037_v63  ;;  %536 = vmatmul.bf16.gmra.mxu2 %v1041_v0 }
  0x8b   : > { %675 = vperm.xlu2 %1146, %v1416_v26   ;;  %v1045_v26 = vld [vmem:[%s1714_s2 + $0x18] sm:$0xff] }
  0x92   : > { %v418_v14 = vpop.permute.xlu2 %417 }
  0x9b   : > { %v423_v23 = vpop.permute.xlu2 %422 }
  0xa3   : > { %v398_v52 = vpop.permute.xlu2 %397 }
  0xa9   : > { %v438_v9 = vpop.permute.xlu0 %437 }
  0xaa   : > { %v428_v11 = vpop.permute.xlu1 %427 }
  0xb2   : > { %v443_v13 = vpop.permute.xlu0 %442  ;;  %v433_v17 = vpop.permute.xlu1 %432 }
  0xba   : > { %v408_v28 = vpop.permute.xlu0 %407  ;;  %v413_v35 = vpop.permute.xlu1 %412 }
  0xc2   : > { %v403_v51 = vpop.permute.xlu0 %402  ;;  %v388_v33 = vpop.permute.xlu1 %387 }
  0xd7   : > { %v1563_v1 = vpop.f32.mrf.mxu0 }
  0xdd   : > { %v522_v2 = vpop.f32.mrf.mxu2 }
  0xdf   : > { %v1565_v3 = vpop.f32.mrf.mxu0 }
  0xe5   : > { %v524_v4 = vpop.f32.mrf.mxu2 }
  0xe6   : > { %v525_v32 = vadd.f32 %v524_v4, %v413_v35 }
  0xe7   : > { %v1567_v5 = vpop.f32.mrf.mxu0 }
  0xe8   : > { %v567_v4 = vmul.f32 0.2, %v525_v32  ;;  %vm551_vm6 = vcmp.ge.f32.partialorder %v525_v32, 0.0 }
  0xea   : > { %v583_v35 = vsel %vm551_vm6, %v525_v32, %v567_v4 }
  0xed   : > { %v527_v6 = vpop.f32.mrf.mxu2 }
  0xef   : > { %v1569_v7 = vpop.f32.mrf.mxu0 }
  0xf5   : > { %v529_v8 = vpop.f32.mrf.mxu2 }
  0xf6   : > { %v530_v0 = vadd.f32 %v529_v8, %v423_v23 }
  0xf7   : > { %v1571_v12 = vpop.f32.mrf.mxu0 }
  0xf8   : > { %v569_v50 = vmul.f32 0.2, %v530_v0  ;;  %vm553_vm4 = vcmp.ge.f32.partialorder %v530_v0, 0.0 }
  0xfa   : > { %v585_v23 = vsel %vm553_vm4, %v530_v0, %v569_v50  ;;  %v1042_v50 = vld [vmem:[%s1714_s2] sm:$0xff] }
  0xfd   : > { %v532_v10 = vpop.f32.mrf.mxu2 }
  0xfe   : > { %v533_v61 = vadd.f32 %v532_v10, %v428_v11  ;;  %v393_v10 = vpop.permute.xlu2 %392  ;;  %v378_v11 = vpop.permute.xlu0 %377 }
  0xff   : > { %v1573_v21 = vpop.f32.mrf.mxu0  ;;  %v508_v32 = vadd.f32 %v1567_v5, %v378_v11 }
 0x100   : > { %v570_v60 = vmul.f32 0.2, %v533_v61  ;;  %vm554_vm3 = vcmp.ge.f32.partialorder %v533_v61, 0.0 }
 0x101   : > { %v560_v5 = vmul.f32 0.2, %v508_v32  ;;  %vm544_vm12 = vcmp.ge.f32.partialorder %v508_v32, 0.0 }
 0x105   : > { %v534_v15 = vpop.f32.mrf.mxu2 }
 0x106   : > { %v535_v58 = vadd.f32 %v534_v15, %v433_v17 }
 0x107   : > { %v517_v49 = vpop.f32.mrf.mxu0 }
 0x108   : > { %v571_v19 = vmul.f32 0.2, %v535_v58  ;;  %vm555_vm2 = vcmp.ge.f32.partialorder %v535_v58, 0.0  ;;  %v518_v17 = vadd.f32 %v517_v49, %v398_v52 }
 0x10a   : > { %v587_v55 = vsel %vm555_vm2, %v535_v58, %v571_v19  ;;  %v564_v58 = vmul.f32 0.2, %v518_v17  ;;  %vm548_vm8 = vcmp.ge.f32.partialorder %v518_v17, 0.0 }
 0x10d   : > { %v537_v31 = vpop.f32.mrf.mxu2 }
 0x10e   : > { %v538_v40 = vadd.f32 %v537_v31, %v438_v9  ;;  %v528_v31 = vadd.f32 %v527_v6, %v418_v14  ;;  %v523_v6 = vadd.f32 %v522_v2, %v408_v28  ;;  %v586_v14 = vsel %vm554_vm3, %v533_v61, %v570_v60  ;;  %v383_v28 = vpop.permute.xlu1 %382 }
 0x10f   : > { %v519_v8 = vpop.f32.mrf.mxu0  ;;  %v513_v2 = vadd.f32 %v1571_v12, %v388_v33  ;;  %v510_v56 = vadd.f32 %v1569_v7, %v383_v28  ;;  %v373_v33 = vpop.permute.xlu0 %372  ;;  %v580_v61 = vsel %vm548_vm8, %v518_v17, %v564_v58 }
 0x110   : > { %v572_v62 = vmul.f32 0.2, %v538_v40  ;;  %vm556_vm0 = vcmp.ge.f32.partialorder %v538_v40, 0.0  ;;  %vm552_vm5 = vcmp.ge.f32.partialorder %v528_v31, 0.0  ;;  %v520_v57 = vadd.f32 %v519_v8, %v403_v51  ;;  %v368_v12 = vpop.permute.xlu2 %367  ;;  %v1044_v8 = vld [vmem:[%s1714_s2 + $0x10] sm:$0xff] }
 0x111   : > { %v566_v19 = vmul.f32 0.2, %v523_v6  ;;  %vm550_vm7 = vcmp.ge.f32.partialorder %v523_v6, 0.0  ;;  %v562_v52 = vmul.f32 0.2, %v513_v2  ;;  %vm546_vm10 = vcmp.ge.f32.partialorder %v513_v2, 0.0 }
 0x112   : > { %v588_v44 = vsel %vm556_vm0, %v538_v40, %v572_v62  ;;  %v515_v40 = vadd.f32 %v1573_v21, %v393_v10  ;;  %vm549_vm9 = vcmp.ge.f32.partialorder %v520_v57, 0.0  ;;  %v505_v39 = vadd.f32 %v1565_v3, %v373_v33 }
 0x113   : > { %v582_v49 = vsel %vm550_vm7, %v523_v6, %v566_v19  ;;  %v503_v53 = vadd.f32 %v1563_v1, %v368_v12  ;;  %v561_v7 = vmul.f32 0.2, %v510_v56  ;;  %v578_v0 = vsel %vm546_vm10, %v513_v2, %v562_v52  ;;  %v1049_v6 = vld [vmem:[%s1714_s2 + $0x38] sm:$0xff] }
 0x114   : > { %v610_v51 = vpack.c.bf16 %v583_v35, %v582_v49  ;;  %v563_v21 = vmul.f32 0.2, %v515_v40  ;;  %vm547_vm11 = vcmp.ge.f32.partialorder %v515_v40, 0.0  ;;  %vm545_vm13 = vcmp.ge.f32.partialorder %v510_v56, 0.0 }
 0x115   : > { %v539_v59 = vpop.f32.mrf.mxu2  ;;  %v559_v60 = vmul.f32 0.2, %v505_v39  ;;  %v558_v3 = vmul.f32 0.2, %v503_v53  ;;  %v577_v1 = vsel %vm545_vm13, %v510_v56, %v561_v7  ;;  %vm542_vm14 = vcmp.ge.f32.partialorder %v503_v53, 0.0 }
 0x116   : > { %v540_v63 = vadd.f32 %v539_v59, %v443_v13  ;;  %v568_v13 = vmul.f32 0.2, %v528_v31  ;;  %v565_v59 = vmul.f32 0.2, %v520_v57  ;;  %vm543_vm15 = vcmp.ge.f32.partialorder %v505_v39, 0.0  ;;  %v616_v10 = vpop.permute.xlu1 %615 }
 0x117   : > { %v575_v47 = vsel %vm543_vm15, %v505_v39, %v559_v60  ;;  %v624_v17 = vpop.permute.xlu0 %623 }
 0x118   : > { %v573_v9 = vmul.f32 0.2, %v540_v63  ;;  %vm557_vm1 = vcmp.ge.f32.partialorder %v540_v63, 0.0  ;;  %v584_v43 = vsel %vm552_vm5, %v528_v31, %v568_v13  ;;  %v581_v62 = vsel %vm549_vm9, %v520_v57, %v565_v59  ;;  %v620_v11 = vpop.permute.xlu2 %619 }
 0x119   : > { %v611_v54 = vpack.c.bf16 %v585_v23, %v584_v43 }
 0x11a   : > { %v589_v18 = vsel %vm557_vm1, %v540_v63, %v573_v9  ;;  %v609_v63 = vpack.c.bf16 %v581_v62, %v580_v61  ;;  %v579_v9 = vsel %vm547_vm11, %v515_v40, %v563_v21 }
 0x11b   : > { %v613_v15 = vpack.c.bf16 %v589_v18, %v588_v44  ;;  %v612_v18 = vpack.c.bf16 %v587_v55, %v586_v14  ;;  %v608_v31 = vpack.c.bf16 %v579_v9, %v578_v0  ;;  %v576_v44 = vsel %vm544_vm12, %v508_v32, %v560_v5  ;;  %v1046_v55 = vld [vmem:[%s1714_s2 + $0x20] sm:$0xff] }
 0x11c   : > { %v607_v34 = vpack.c.bf16 %v577_v1, %v576_v44 }
 0x11d   : > { %726 = vmatpush.bf16.msra.mxu1 %v613_v15  ;;  %1058 = vmatpush.bf16.msra.mxu3 %v613_v15  ;;  %v574_v15 = vsel %vm542_vm14, %v503_v53, %v558_v3 }
 0x11e   : > { %v606_v38 = vpack.c.bf16 %v575_v47, %v574_v15  ;;  %v628_v13 = vpop.permute.xlu1 %627 }
 0x11f   : > { %v1630_v49 = vpop.permute.xlu0 %643 }
 0x120   : > { %v1619_v14 = vpop.permute.xlu2 %631 }
 0x121   : > { %727 = vmatpush.bf16.msra.mxu1 %v612_v18  ;;  %1059 = vmatpush.bf16.msra.mxu3 %v612_v18 }
 0x125   : > { %728 = vmatpush.bf16.msra.mxu1 %v611_v54  ;;  %1060 = vmatpush.bf16.msra.mxu3 %v611_v54 }
 0x126   : > { %v1621_v4 = vpop.permute.xlu1 %635 }
 0x128   : > { %v1623_v19 = vpop.permute.xlu2 %639 }
 0x129   : > { %729 = vmatpush.bf16.msra.mxu1 %v610_v51  ;;  %1061 = vmatpush.bf16.msra.mxu3 %v610_v51 }
 0x12d   : > { %730 = vmatpush.bf16.msra.mxu1 %v609_v63  ;;  %1062 = vmatpush.bf16.msra.mxu3 %v609_v63 }
 0x12e   : > { %v648_v43 = vpop.permute.xlu1 %647 }
 0x130   : > { %v652_v33 = vpop.permute.xlu2 %651 }
 0x131   : > { %731 = vmatpush.bf16.msra.mxu1 %v608_v31  ;;  %1063 = vmatpush.bf16.msra.mxu3 %v608_v31 }
 0x135   : > { %732 = vmatpush.bf16.msra.mxu1 %v607_v34  ;;  %1064 = vmatpush.bf16.msra.mxu3 %v607_v34 }
 0x136   : > { %v660_v15 = vpop.permute.xlu1 %659 }
 0x139   : > { %733 = vmatpush.bf16.msra.mxu1 %v606_v38  ;;  %1065 = vmatpush.bf16.msra.mxu3 %v606_v38 }
 0x13c   : > { %734 = vmatmul.bf16.vlgmr.msra.gmra.mxu1 %v1042_v50  ;;  %754 = vmatmul.bf16.vlgmr.msra.gmra.mxu3 %v1046_v55 }
 0x14c   : > { %739 = vmatmul.bf16.gmra.mxu1 %v1043_v27  ;;  %759 = vmatmul.bf16.gmra.mxu3 %v1047_v48 }
 0x15c   : > { %744 = vmatmul.bf16.gmra.mxu1 %v1044_v8  ;;  %764 = vmatmul.bf16.gmra.mxu3 %v1048_v16 }
 0x16c   : > { %749 = vmatmul.bf16.gmra.mxu1 %v1045_v26  ;;  %769 = vmatmul.bf16.gmra.mxu3 %v1049_v6  ;;  %v664_v26 = vpop.permute.xlu2 %663 }
 0x1b9   : > { %v735_v18 = vpop.f32.mrf.mxu1 }
 0x1ba   : > { %v736_v57 = vadd.f32 %v735_v18, %v616_v10 }
 0x1bc   : > { %vm775_vm0 = vcmp.ge.f32.partialorder %v736_v57, 0.0  ;;  %v791_v23 = vmul.f32 0.2, %v736_v57 }
 0x1be   : > { %v807_v54 = vsel %vm775_vm0, %v736_v57, %v791_v23 }
 0x1bf   : > { %v823_v35 = vadd.f32 %v807_v54, %v1483_v45  ;;  %v755_v2 = vpop.f32.mrf.mxu3 }
 0x1c0   : > { %v756_v28 = vadd.f32 %v755_v2, %v648_v43 }
 0x1c1   : > { %839 = vst [vmem:[%s1627_s27] sm:$0xff] %v823_v35  ;;  %v737_v40 = vpop.f32.mrf.mxu1 }
 0x1c2   : > { %vm783_vm1 = vcmp.ge.f32.partialorder %v756_v28, 0.0  ;;  %v799_v58 = vmul.f32 0.2, %v756_v28  ;;  %v738_v59 = vadd.f32 %v737_v40, %v620_v11 }
 0x1c4   : > { %v815_v32 = vsel %vm783_vm1, %v756_v28, %v799_v58  ;;  %vm776_vm2 = vcmp.ge.f32.partialorder %v738_v59, 0.0  ;;  %v792_v56 = vmul.f32 0.2, %v738_v59 }
 0x1c5   : > { %v831_v51 = vadd.f32 %v815_v32, %v1426_v29  ;;  %v656_v29 = vpop.permute.xlu0 %655 }
 0x1c6   : > { %v808_v45 = vsel %vm776_vm2, %v738_v59, %v792_v56  ;;  %v672_v59 = vpop.permute.xlu1 %671 }
 0x1c7   : > { %847 = vst [vmem:[%s1627_s27 + $0x40] sm:$0xff] %v831_v51  ;;  %v824_v12 = vadd.f32 %v808_v45, %v1486_v46  ;;  %v757_v52 = vpop.f32.mrf.mxu3 }
 0x1c8   : > { %v758_v21 = vadd.f32 %v757_v52, %v652_v33  ;;  %v1729_v52 = vld [vmem:[#allocation6_spill] sm:$0xff] }
 0x1c9   : > { %840 = vst [vmem:[%s1627_s27 + $0x8] sm:$0xff] %v824_v12  ;;  %v740_v61 = vpop.f32.mrf.mxu1 }
 0x1ca   : > { %vm784_vm3 = vcmp.ge.f32.partialorder %v758_v21, 0.0  ;;  %v800_v62 = vmul.f32 0.2, %v758_v21  ;;  %v741_v39 = vadd.f32 %v740_v61, %v624_v17 }
 0x1cc   : > { %v816_v53 = vsel %vm784_vm3, %v758_v21, %v800_v62  ;;  %vm777_vm4 = vcmp.ge.f32.partialorder %v741_v39, 0.0  ;;  %v793_v63 = vmul.f32 0.2, %v741_v39  ;;  %v676_v62 = vpop.permute.xlu2 %675 }
 0x1cd   : > { %v832_v5 = vadd.f32 %v816_v53, %v1429_v30  ;;  %v668_v23 = vpop.permute.xlu0 %667 }
 0x1ce   : > { %v809_v7 = vsel %vm777_vm4, %v741_v39, %v793_v63  ;;  %v1730_v39 = vld [vmem:[#allocation9_spill] sm:$0xff] }
 0x1cf   : > { %848 = vst [vmem:[%s1627_s27 + $0x48] sm:$0xff] %v832_v5  ;;  %v825_v0 = vadd.f32 %v809_v7, %v1468_v41  ;;  %v760_v46 = vpop.f32.mrf.mxu3  ;;  %v1731_v7 = vld [vmem:[#allocation7_spill] sm:$0xff] }
 0x1d0   : > { %v761_v9 = vadd.f32 %v760_v46, %v656_v29 }
 0x1d1   : > { %841 = vst [vmem:[%s1627_s27 + $0x10] sm:$0xff] %v825_v0  ;;  %v742_v31 = vpop.f32.mrf.mxu1 }
 0x1d2   : > { %vm785_vm5 = vcmp.ge.f32.partialorder %v761_v9, 0.0  ;;  %v801_v60 = vmul.f32 0.2, %v761_v9  ;;  %v743_v3 = vadd.f32 %v742_v31, %v628_v13 }
 0x1d4   : > { %v817_v44 = vsel %vm785_vm5, %v761_v9, %v801_v60  ;;  %vm778_vm6 = vcmp.ge.f32.partialorder %v743_v3, 0.0  ;;  %v794_v1 = vmul.f32 0.2, %v743_v3 }
 0x1d5   : > { %v833_v34 = vadd.f32 %v817_v44, %v1408_v24 }
 0x1d6   : > { %v810_v30 = vsel %vm778_vm6, %v743_v3, %v794_v1 }
 0x1d7   : > { %849 = vst [vmem:[%s1627_s27 + $0x50] sm:$0xff] %v833_v34  ;;  %v826_v47 = vadd.f32 %v810_v30, %v1471_v42  ;;  %v762_v41 = vpop.f32.mrf.mxu3 }
 0x1d8   : > { %v763_v38 = vadd.f32 %v762_v41, %v660_v15 }
 0x1d9   : > { %842 = vst [vmem:[%s1627_s27 + $0x18] sm:$0xff] %v826_v47  ;;  %v745_v50 = vpop.f32.mrf.mxu1 }
 0x1da   : > { %vm786_vm7 = vcmp.ge.f32.partialorder %v763_v38, 0.0  ;;  %v802_v55 = vmul.f32 0.2, %v763_v38  ;;  %v746_v27 = vadd.f32 %v745_v50, %v1619_v14 }
 0x1dc   : > { %v818_v48 = vsel %vm786_vm7, %v763_v38, %v802_v55  ;;  %vm779_vm8 = vcmp.ge.f32.partialorder %v746_v27, 0.0  ;;  %v795_v8 = vmul.f32 0.2, %v746_v27 }
 0x1dd   : > { %v834_v24 = vadd.f32 %v818_v48, %v1411_v25 }
 0x1de   : > { %v811_v16 = vsel %vm779_vm8, %v746_v27, %v795_v8 }
 0x1df   : > { %850 = vst [vmem:[%s1627_s27 + $0x58] sm:$0xff] %v834_v24  ;;  %v827_v42 = vadd.f32 %v811_v16, %v1449_v36  ;;  %v765_v6 = vpop.f32.mrf.mxu3 }
 0x1e0   : > { %v766_v10 = vadd.f32 %v765_v6, %v664_v26 }
 0x1e1   : > { %843 = vst [vmem:[%s1627_s27 + $0x20] sm:$0xff] %v827_v42  ;;  %v747_v11 = vpop.f32.mrf.mxu1 }
 0x1e2   : > { %vm787_vm9 = vcmp.ge.f32.partialorder %v766_v10, 0.0  ;;  %v803_v13 = vmul.f32 0.2, %v766_v10  ;;  %v748_v14 = vadd.f32 %v747_v11, %v1621_v4 }
 0x1e4   : > { %v819_v18 = vsel %vm787_vm9, %v766_v10, %v803_v13  ;;  %vm780_vm10 = vcmp.ge.f32.partialorder %v748_v14, 0.0  ;;  %v796_v17 = vmul.f32 0.2, %v748_v14 }
 0x1e5   : > { %v835_v25 = vadd.f32 %v819_v18, %v1398_v20 }
 0x1e6   : > { %v812_v57 = vsel %vm780_vm10, %v748_v14, %v796_v17 }
 0x1e7   : > { %851 = vst [vmem:[%s1627_s27 + $0x60] sm:$0xff] %v835_v25  ;;  %v828_v36 = vadd.f32 %v812_v57, %v1452_v37  ;;  %v767_v43 = vpop.f32.mrf.mxu3  ;;  %v1728_v37 = vld [vmem:[#allocation8_spill] sm:$0xff] }
 0x1e8   : > { %v768_v54 = vadd.f32 %v767_v43, %v668_v23 }
 0x1e9   : > { %844 = vst [vmem:[%s1627_s27 + $0x28] sm:$0xff] %v828_v36  ;;  %v750_v35 = vpop.f32.mrf.mxu1 }
 0x1ea   : > { %vm788_vm11 = vcmp.ge.f32.partialorder %v768_v54, 0.0  ;;  %v804_v4 = vmul.f32 0.2, %v768_v54  ;;  %v751_v2 = vadd.f32 %v750_v35, %v1623_v19 }
 0x1ec   : > { %v820_v28 = vsel %vm788_vm11, %v768_v54, %v804_v4  ;;  %vm781_vm12 = vcmp.ge.f32.partialorder %v751_v2, 0.0  ;;  %v797_v20 = vmul.f32 0.2, %v751_v2 }
 0x1ed   : > { %v836_v40 = vadd.f32 %v820_v28, %v1403_v22 }
 0x1ee   : > { %v813_v58 = vsel %vm781_vm12, %v751_v2, %v797_v20 }
 0x1ef   : > { %852 = vst [vmem:[%s1627_s27 + $0x68] sm:$0xff] %v836_v40  ;;  %v829_v32 = vadd.f32 %v813_v58, %v1728_v37  ;;  %v770_v56 = vpop.f32.mrf.mxu3 }
 0x1f0   : > { %v771_v51 = vadd.f32 %v770_v56, %v672_v59 }
 0x1f1   : > { %845 = vst [vmem:[%s1627_s27 + $0x30] sm:$0xff] %v829_v32  ;;  %v752_v45 = vpop.f32.mrf.mxu1 }
 0x1f2   : > { %vm789_vm13 = vcmp.ge.f32.partialorder %v771_v51, 0.0  ;;  %v805_v19 = vmul.f32 0.2, %v771_v51  ;;  %v753_v33 = vadd.f32 %v752_v45, %v1630_v49 }
 0x1f4   : > { %v821_v22 = vsel %vm789_vm13, %v771_v51, %v805_v19  ;;  %vm782_vm14 = vcmp.ge.f32.partialorder %v753_v33, 0.0  ;;  %v798_v12 = vmul.f32 0.2, %v753_v33 }
 0x1f5   : > { %v837_v21 = vadd.f32 %v821_v22, %v1729_v52 }
 0x1f6   : > { %v814_v61 = vsel %vm782_vm14, %v753_v33, %v798_v12 }
 0x1f7   : > { %853 = vst [vmem:[%s1627_s27 + $0x70] sm:$0xff] %v837_v21  ;;  %v830_v53 = vadd.f32 %v814_v61, %v1730_v39  ;;  %v772_v63 = vpop.f32.mrf.mxu3 }
 0x1f8   : > { %v773_v5 = vadd.f32 %v772_v63, %v676_v62 }
 0x1f9   : > { %846 = vst [vmem:[%s1627_s27 + $0x38] sm:$0xff] %v830_v53 }
 0x1fa   : > { %vm790_vm15 = vcmp.ge.f32.partialorder %v773_v5, 0.0  ;;  %v806_v49 = vmul.f32 0.2, %v773_v5 }
 0x1fc   : > { %v822_v29 = vsel %vm790_vm15, %v773_v5, %v806_v49 }
 0x1fd   : > { %v838_v0 = vadd.f32 %v822_v29, %v1731_v7 }
 0x1ff   : > { %854 = vst [vmem:[%s1627_s27 + $0x78] sm:$0xff] %v838_v0 }
 0x200   : > { %1175 = shalt.err (!%p1172_p7)
}
 0x201   : > { %s1246_s28 = smov 128   ;;  %s1247_s27 = smov 256  }
 0x202   : > { %s1248_s19 = smov 8  }
 0x203   : > { %1066 = dma.vmem_to_hbm [thread:$0]  (%p1334_p8), %s870_s11, 2048, %s872_s12, %s856_s13, %s1246_s28, %s1247_s27, %s1248_s19  }
 0x204 PF: > { %p1072_p10 = scmp.ge.s32.totalorder %s1242_s22, 2  ;;  %s886_s10 = sand.u32 1, %s1214_s15  }
 0x205   : > { %s887_s18 = scalar_lea.sflag [#allocation4], %s886_s10 }
 0x206   : > { %p1069_p11 = pnand %p1072_p10, %p1338_p9 }
 0x208   : > { %p1070_p12 = pneg %p1069_p11 }
 0x20a   : > { %1209 = dma.done.wait (%p1070_p12), %s887_s18, 2048  }
 0x20b   : > { %1211 = vsyncadd (%p1070_p12), %s887_s18, 4294965248  ;;  %s17_s22 = sadd.s32 1, %s1242_s22   ;;  %s1732_s15 = smov %s1218_s16 }
 0x20c   : > { %p14_p13 = scmp.ge.s32.totalorder %s17_s22, 6   ;;  %s1733_s16 = smov %s1222_s17 }
 0x20d   : > { %s1734_s17 = smov %s1346_s8  ;;  %s1735_s18 = smov %s1234_s20 }
 0x20e   : > { %s1736_s19 = smov %s1238_s21  ;;  %s1737_s20 = smov %s1740_s25 }
 0x20f   : > { %s1738_s21 = smov %s1744_s26  ;;  %16 = sbr.rel (!%p14_p13) target bundleno = 5 (0x5), region = 114 }
 0x214   :  { %893 = vsyncpa [#allocation4], 1 }
 0x215   :  { %895 = vsyncpa [#allocation4 + $0x1], 1 }

</bundles_post_ra>
